<compile_context>
chip_gen: v6e
topology: v6e:2x2x1
jax: 0.10.0
libtpu: 0.0.40
codegen_flags: <defaults>
</compile_context>

<pallas_src>
import jax
import jax.numpy as jnp
from jax.experimental import pallas as pl
from jax.experimental.pallas import tpu as pltpu

LAMBDA_COEF = 0.01
NUM_NETS = 2


def _semi_sup_bce_kernel(yp_ref, m0_ref, ym_ref, tsup_ref, x_ref, w_ref, b_ref,
                         sums_ref):
    # yp_ref  : [B, blk]     VMEM (native dtype) predicted logits
    # m0_ref  : [B, blk]     VMEM int8           (m[:,0] != 0)
    # ym_ref  : [B, blk]     VMEM int8           (y.sum(1) != 0)
    # tsup_ref: [B, blk]     VMEM int8           (y[:,2] == 0)
    # x_ref   : [B, C, blk]  VMEM (native dtype) frozen-net input
    # w_ref   : [K, C]       SMEM f32            per-net 1x1-conv weights
    # b_ref   : [K]          SMEM f32            per-net biases
    # sums_ref: [1, 4]       SMEM f32 output accumulator:
    #           [sup_num, sup_den, unsup_num, unsup_den]
    i = pl.program_id(0)

    @pl.when(i == 0)
    def _init():
        for j in range(4):
            sums_ref[0, j] = 0.0

    B, blk = yp_ref.shape
    C = x_ref.shape[1]
    K = w_ref.shape[0]

    # ---- logits-form BCE terms: 1 exp + 1 log per element -------------------
    ypf = yp_ref[...].astype(jnp.float32)
    sp = jnp.maximum(ypf, 0.0) + jnp.log(1.0 + jnp.exp(-jnp.abs(ypf)))  # softplus
    # log(sigmoid(yp)) / log(1 - sigmoid(yp)); clamp at -100 matches torch BCE.
    log_p = jnp.maximum(ypf - sp, -100.0)
    log_1mp = jnp.maximum(-sp, -100.0)
    neg_log_1mp = -log_1mp
    d = log_p - log_1mp
    # BCE(target t) = -(t*log_p + (1-t)*log_1mp) = neg_log_1mp - t*d

    m0 = m0_ref[...].astype(jnp.float32)      # mask = m[:,0] != 0
    ym = ym_ref[...].astype(jnp.float32)      # ym   = y.sum(1) != 0
    t_sup = tsup_ref[...].astype(jnp.float32)  # sup target = (y[:,2] == 0)

    sup_sel = ym * m0
    bce_sup = neg_log_1mp - t_sup * d

    # ---- frozen nets: sum_k(w_k . x + b_k) == (sum_k w_k) . x + sum_k b_k ----
    b_total = b_ref[0]
    for k in range(1, K):
        b_total = b_total + b_ref[k]
    y_nets = jnp.zeros((B, blk), dtype=jnp.float32)
    for c in range(C):
        coef = w_ref[0, c]
        for k in range(1, K):
            coef = coef + w_ref[k, c]
        y_nets = y_nets + x_ref[:, c, :].astype(jnp.float32) * coef
    y_nets = y_nets + b_total

    t_unsup = (y_nets >= 0.0).astype(jnp.float32)
    bce_unsup = neg_log_1mp - t_unsup * d

    # ---- per-block partial sums (masked mean = masked-sum / count) ----------
    sums_ref[0, 0] = sums_ref[0, 0] + jnp.sum(bce_sup * sup_sel)
    sums_ref[0, 1] = sums_ref[0, 1] + jnp.sum(sup_sel)
    sums_ref[0, 2] = sums_ref[0, 2] + jnp.sum(bce_unsup * m0)
    sums_ref[0, 3] = sums_ref[0, 3] + jnp.sum(m0)


def _pick_block_hw(hw, target=512):
    if hw <= target:
        return hw
    for blk in (target, 256, 128):
        if hw % blk == 0:
            return blk
    return hw  # fallback: single whole-array block


def semi_supervised_bce_loss(x, yp, y, m, net_w, net_b, *, block_hw=None):
    """x: [B,C,H,W], yp: [B,H,W], y: [B,Cy,H,W], m: [B,Cm,H,W],
    net_w: [K,C], net_b: [K]  ->  scalar f32 loss."""
    B, C, H, W = x.shape
    hw = H * W

    x_f = x.reshape(B, C, hw)       # native dtype, no f32 upcast in the wrapper
    yp_f = yp.reshape(B, hw)
    # Ship only the planes the loss uses, as 0/1 int8 maps (cheap XLA prep,
    # cuts label/mask DMA by the channel counts and by dtype width).
    m_r = m.reshape(B, m.shape[1], hw)
    y_r = y.reshape(B, y.shape[1], hw)
    m0_i8 = (m_r[:, 0, :] != 0).astype(jnp.int8)
    ym_i8 = (jnp.sum(y_r, axis=1) != 0).astype(jnp.int8)
    tsup_i8 = (y_r[:, 2, :] == 0).astype(jnp.int8)
    w_f = net_w.astype(jnp.float32)
    b_f = net_b.astype(jnp.float32)

    if block_hw is None:
        block_hw = _pick_block_hw(hw)
    assert hw % block_hw == 0, "block_hw must divide H*W"
    n_blocks = hw // block_hw

    grid_spec = pltpu.PrefetchScalarGridSpec(
        num_scalar_prefetch=0,
        grid=(n_blocks,),
        in_specs=[
            pl.BlockSpec((B, block_hw), lambda i: (0, i)),        # yp
            pl.BlockSpec((B, block_hw), lambda i: (0, i)),        # m0 (int8)
            pl.BlockSpec((B, block_hw), lambda i: (0, i)),        # ym (int8)
            pl.BlockSpec((B, block_hw), lambda i: (0, i)),        # t_sup (int8)
            pl.BlockSpec((B, C, block_hw), lambda i: (0, 0, i)),  # x
            pl.BlockSpec(memory_space=pltpu.MemorySpace.SMEM),    # net weights
            pl.BlockSpec(memory_space=pltpu.MemorySpace.SMEM),    # net biases
        ],
        out_specs=pl.BlockSpec(memory_space=pltpu.MemorySpace.SMEM),
    )

    sums = pl.pallas_call(
        _semi_sup_bce_kernel,
        out_shape=jax.ShapeDtypeStruct((1, 4), jnp.float32),
        grid_spec=grid_spec,
        compiler_params=pltpu.CompilerParams(
            dimension_semantics=("arbitrary",)),
    )(yp_f, m0_i8, ym_i8, tsup_i8, x_f, w_f, b_f)

    # Finalize (masked means + lambda combine) in JAX, per perf review.
    # TODO(synk): empty selections give NaN, same as PyTorch mean over an empty
    # tensor; add a guard here if that case can occur in practice.
    sup_loss = sums[0, 0] / sums[0, 1]
    unsup_loss = sums[0, 2] / sums[0, 3]
    return sup_loss + LAMBDA_COEF * unsup_loss


def _reference_loss(x, yp, y, m, net_w, net_b):
    """Pure-JAX reference mirroring the PyTorch module (sigmoid + clamped logs)."""
    p = jax.nn.sigmoid(yp.astype(jnp.float32))
    log_p = jnp.maximum(jnp.log(p), -100.0)
    log_1mp = jnp.maximum(jnp.log(1.0 - p), -100.0)
    mask = (m[:, 0] != 0)
    ym = (jnp.sum(y, axis=1) != 0)
    t_sup = (y[:, 2] == 0).astype(jnp.float32)
    sel = (ym & mask).astype(jnp.float32)
    bce_sup = -(t_sup * log_p + (1.0 - t_sup) * log_1mp)
    sup = jnp.sum(bce_sup * sel) / jnp.sum(sel)
    y_nets = jnp.einsum('kc,bchw->bhw', net_w, x.astype(jnp.float32)) + jnp.sum(net_b)
    t_uns = (y_nets >= 0.0).astype(jnp.float32)
    bce_uns = -(t_uns * log_p + (1.0 - t_uns) * log_1mp)
    mf = mask.astype(jnp.float32)
    uns = jnp.sum(bce_uns * mf) / jnp.sum(mf)
    return sup + LAMBDA_COEF * uns


if __name__ == "__main__":
    B, C, H, W = 2, 4, 16, 16
    Cy, Cm = 3, 2

    key = jax.random.PRNGKey(0)
    kx, kyp, ky, km = jax.random.split(key, 4)

    x = jax.random.normal(kx, (B, C, H, W), dtype=jnp.float32)
    yp = jax.random.normal(kyp, (B, H, W), dtype=jnp.float32)
    # labels / mask as 0-1 maps (as in the segmentation dataset)
    y = (jax.random.uniform(ky, (B, Cy, H, W)) > 0.5).astype(jnp.float32)
    m = (jax.random.uniform(km, (B, Cm, H, W)) > 0.3).astype(jnp.float32)

    # Deterministic frozen-net parameters (NUM_NETS 1x1-conv heads over C chans)
    net_w = (jnp.arange(NUM_NETS * C, dtype=jnp.float32).reshape(NUM_NETS, C)
             - (NUM_NETS * C - 1) / 2.0) * 0.1
    net_b = jnp.array([0.05, -0.05], dtype=jnp.float32)

    loss_fn = jax.jit(semi_supervised_bce_loss, static_argnames=("block_hw",))
    loss = loss_fn(x, yp, y, m, net_w, net_b, block_hw=128)  # grid of 2 blocks
    jax.block_until_ready(loss)

    ref = _reference_loss(x, yp, y, m, net_w, net_b)
    assert loss.shape == () and bool(jnp.isfinite(loss))
    assert jnp.allclose(loss, ref, rtol=1e-4, atol=1e-5), (loss, ref)
    print("KERNEL_OK")
</pallas_src>

<mosaic_0001>
module attributes {stable_mosaic.version = 11 : i64} {
  func.func @_semi_sup_bce_kernel(%arg0: i32, %arg1: memref<2x128xf32, #tpu.memory_space<vmem>>, %arg2: memref<2x128xi8, #tpu.memory_space<vmem>>, %arg3: memref<2x128xi8, #tpu.memory_space<vmem>>, %arg4: memref<2x128xi8, #tpu.memory_space<vmem>>, %arg5: memref<2x4x128xf32, #tpu.memory_space<vmem>>, %arg6: memref<2x4xf32, #tpu.memory_space<smem>>, %arg7: memref<2xf32, #tpu.memory_space<smem>>, %arg8: memref<1x4xf32, #tpu.memory_space<smem>>) attributes {dimension_semantics = [#tpu.dimension_semantics<arbitrary>], iteration_bounds = array<i64: 2>, scalar_prefetch = 0 : i64, scratch_operands = 0 : i64, tpu.core_type = #tpu.core_type<tc>, window_params = [{transform_indices = @transform_0, window_bounds = array<i64: 2, 128>}, {transform_indices = @transform_1, window_bounds = array<i64: 2, 128>}, {transform_indices = @transform_2, window_bounds = array<i64: 2, 128>}, {transform_indices = @transform_3, window_bounds = array<i64: 2, 128>}, {transform_indices = @transform_4, window_bounds = array<i64: 2, 4, 128>}, {transform_indices = @transform_5, window_bounds = array<i64: 2, 4>}, {transform_indices = @transform_6, window_bounds = array<i64: 2>}, {transform_indices = @transform_7, window_bounds = array<i64: 1, 4>}]} {
    %c0_i32 = arith.constant 0 : i32
    %0 = arith.cmpi eq, %arg0, %c0_i32 : i32
    %1 = arith.extui %0 : i1 to i32
    %c0_i32_0 = arith.constant 0 : i32
    %2 = arith.cmpi ne, %1, %c0_i32_0 : i32
    scf.if %2 {
      %cst_63 = arith.constant 0.000000e+00 : f32
      %c0_64 = arith.constant 0 : index
      %c0_65 = arith.constant 0 : index
      %107 = memref.load %arg8[%c0_64, %c0_65] : memref<1x4xf32, #tpu.memory_space<smem>>
      memref.store %cst_63, %arg8[%c0_64, %c0_65] : memref<1x4xf32, #tpu.memory_space<smem>>
      %cst_66 = arith.constant 0.000000e+00 : f32
      %c0_67 = arith.constant 0 : index
      %c1_68 = arith.constant 1 : index
      %108 = memref.load %arg8[%c0_67, %c1_68] : memref<1x4xf32, #tpu.memory_space<smem>>
      memref.store %cst_66, %arg8[%c0_67, %c1_68] : memref<1x4xf32, #tpu.memory_space<smem>>
      %cst_69 = arith.constant 0.000000e+00 : f32
      %c0_70 = arith.constant 0 : index
      %c2_71 = arith.constant 2 : index
      %109 = memref.load %arg8[%c0_70, %c2_71] : memref<1x4xf32, #tpu.memory_space<smem>>
      memref.store %cst_69, %arg8[%c0_70, %c2_71] : memref<1x4xf32, #tpu.memory_space<smem>>
      %cst_72 = arith.constant 0.000000e+00 : f32
      %c0_73 = arith.constant 0 : index
      %c3_74 = arith.constant 3 : index
      %110 = memref.load %arg8[%c0_73, %c3_74] : memref<1x4xf32, #tpu.memory_space<smem>>
      memref.store %cst_72, %arg8[%c0_73, %c3_74] : memref<1x4xf32, #tpu.memory_space<smem>>
    } else {
    }
    %c0 = arith.constant 0 : index
    %c0_1 = arith.constant 0 : index
    %3 = vector.load %arg1[%c0, %c0_1] : memref<2x128xf32, #tpu.memory_space<vmem>>, vector<2x128xf32>
    %cst = arith.constant 0.000000e+00 : f32
    %4 = vector.broadcast %cst : f32 to vector<2x128xf32>
    %5 = arith.maximumf %3, %4 : vector<2x128xf32>
    %6 = math.absf %3 : vector<2x128xf32>
    %cst_2 = arith.constant 0.000000e+00 : f32
    %7 = vector.broadcast %cst_2 : f32 to vector<2x128xf32>
    %8 = arith.subf %7, %6 : vector<2x128xf32>
    %9 = math.exp %8 : vector<2x128xf32>
    %cst_3 = arith.constant 1.000000e+00 : f32
    %10 = vector.broadcast %cst_3 : f32 to vector<2x128xf32>
    %11 = arith.addf %10, %9 : vector<2x128xf32>
    %12 = math.log %11 : vector<2x128xf32>
    %13 = arith.addf %5, %12 : vector<2x128xf32>
    %14 = arith.subf %3, %13 : vector<2x128xf32>
    %cst_4 = arith.constant -1.000000e+02 : f32
    %15 = vector.broadcast %cst_4 : f32 to vector<2x128xf32>
    %16 = arith.maximumf %14, %15 : vector<2x128xf32>
    %cst_5 = arith.constant 0.000000e+00 : f32
    %17 = vector.broadcast %cst_5 : f32 to vector<2x128xf32>
    %18 = arith.subf %17, %13 : vector<2x128xf32>
    %cst_6 = arith.constant -1.000000e+02 : f32
    %19 = vector.broadcast %cst_6 : f32 to vector<2x128xf32>
    %20 = arith.maximumf %18, %19 : vector<2x128xf32>
    %cst_7 = arith.constant 0.000000e+00 : f32
    %21 = vector.broadcast %cst_7 : f32 to vector<2x128xf32>
    %22 = arith.subf %21, %20 : vector<2x128xf32>
    %23 = arith.subf %16, %20 : vector<2x128xf32>
    %c0_8 = arith.constant 0 : index
    %c0_9 = arith.constant 0 : index
    %24 = vector.load %arg2[%c0_8, %c0_9] : memref<2x128xi8, #tpu.memory_space<vmem>>, vector<2x128xi8>
    %25 = arith.sitofp %24 : vector<2x128xi8> to vector<2x128xf32>
    %c0_10 = arith.constant 0 : index
    %c0_11 = arith.constant 0 : index
    %26 = vector.load %arg3[%c0_10, %c0_11] : memref<2x128xi8, #tpu.memory_space<vmem>>, vector<2x128xi8>
    %27 = arith.sitofp %26 : vector<2x128xi8> to vector<2x128xf32>
    %c0_12 = arith.constant 0 : index
    %c0_13 = arith.constant 0 : index
    %28 = vector.load %arg4[%c0_12, %c0_13] : memref<2x128xi8, #tpu.memory_space<vmem>>, vector<2x128xi8>
    %29 = arith.sitofp %28 : vector<2x128xi8> to vector<2x128xf32>
    %30 = arith.mulf %27, %25 : vector<2x128xf32>
    %31 = arith.mulf %29, %23 : vector<2x128xf32>
    %32 = arith.subf %22, %31 : vector<2x128xf32>
    %c0_14 = arith.constant 0 : index
    %33 = memref.load %arg7[%c0_14] : memref<2xf32, #tpu.memory_space<smem>>
    %c1 = arith.constant 1 : index
    %34 = memref.load %arg7[%c1] : memref<2xf32, #tpu.memory_space<smem>>
    %35 = arith.addf %33, %34 : f32
    %cst_15 = arith.constant 0.000000e+00 : f32
    %36 = vector.broadcast %cst_15 : f32 to vector<2x128xf32>
    %c0_16 = arith.constant 0 : index
    %c0_17 = arith.constant 0 : index
    %37 = memref.load %arg6[%c0_16, %c0_17] : memref<2x4xf32, #tpu.memory_space<smem>>
    %c1_18 = arith.constant 1 : index
    %c0_19 = arith.constant 0 : index
    %38 = memref.load %arg6[%c1_18, %c0_19] : memref<2x4xf32, #tpu.memory_space<smem>>
    %39 = arith.addf %37, %38 : f32
    %c0_20 = arith.constant 0 : index
    %c0_21 = arith.constant 0 : index
    %c0_22 = arith.constant 0 : index
    %40 = vector.load %arg5[%c0_20, %c0_21, %c0_22] : memref<2x4x128xf32, #tpu.memory_space<vmem>>, vector<2x1x128xf32>
    %41 = vector.shape_cast %40 : vector<2x1x128xf32> to vector<2x128xf32>
    %42 = vector.broadcast %39 : f32 to vector<2x128xf32>
    %43 = arith.mulf %41, %42 : vector<2x128xf32>
    %44 = arith.addf %36, %43 : vector<2x128xf32>
    %c0_23 = arith.constant 0 : index
    %c1_24 = arith.constant 1 : index
    %45 = memref.load %arg6[%c0_23, %c1_24] : memref<2x4xf32, #tpu.memory_space<smem>>
    %c1_25 = arith.constant 1 : index
    %c1_26 = arith.constant 1 : index
    %46 = memref.load %arg6[%c1_25, %c1_26] : memref<2x4xf32, #tpu.memory_space<smem>>
    %47 = arith.addf %45, %46 : f32
    %c0_27 = arith.constant 0 : index
    %c1_28 = arith.constant 1 : index
    %c0_29 = arith.constant 0 : index
    %48 = vector.load %arg5[%c0_27, %c1_28, %c0_29] : memref<2x4x128xf32, #tpu.memory_space<vmem>>, vector<2x1x128xf32>
    %49 = vector.shape_cast %48 : vector<2x1x128xf32> to vector<2x128xf32>
    %50 = vector.broadcast %47 : f32 to vector<2x128xf32>
    %51 = arith.mulf %49, %50 : vector<2x128xf32>
    %52 = arith.addf %44, %51 : vector<2x128xf32>
    %c0_30 = arith.constant 0 : index
    %c2 = arith.constant 2 : index
    %53 = memref.load %arg6[%c0_30, %c2] : memref<2x4xf32, #tpu.memory_space<smem>>
    %c1_31 = arith.constant 1 : index
    %c2_32 = arith.constant 2 : index
    %54 = memref.load %arg6[%c1_31, %c2_32] : memref<2x4xf32, #tpu.memory_space<smem>>
    %55 = arith.addf %53, %54 : f32
    %c0_33 = arith.constant 0 : index
    %c2_34 = arith.constant 2 : index
    %c0_35 = arith.constant 0 : index
    %56 = vector.load %arg5[%c0_33, %c2_34, %c0_35] : memref<2x4x128xf32, #tpu.memory_space<vmem>>, vector<2x1x128xf32>
    %57 = vector.shape_cast %56 : vector<2x1x128xf32> to vector<2x128xf32>
    %58 = vector.broadcast %55 : f32 to vector<2x128xf32>
    %59 = arith.mulf %57, %58 : vector<2x128xf32>
    %60 = arith.addf %52, %59 : vector<2x128xf32>
    %c0_36 = arith.constant 0 : index
    %c3 = arith.constant 3 : index
    %61 = memref.load %arg6[%c0_36, %c3] : memref<2x4xf32, #tpu.memory_space<smem>>
    %c1_37 = arith.constant 1 : index
    %c3_38 = arith.constant 3 : index
    %62 = memref.load %arg6[%c1_37, %c3_38] : memref<2x4xf32, #tpu.memory_space<smem>>
    %63 = arith.addf %61, %62 : f32
    %c0_39 = arith.constant 0 : index
    %c3_40 = arith.constant 3 : index
    %c0_41 = arith.constant 0 : index
    %64 = vector.load %arg5[%c0_39, %c3_40, %c0_41] : memref<2x4x128xf32, #tpu.memory_space<vmem>>, vector<2x1x128xf32>
    %65 = vector.shape_cast %64 : vector<2x1x128xf32> to vector<2x128xf32>
    %66 = vector.broadcast %63 : f32 to vector<2x128xf32>
    %67 = arith.mulf %65, %66 : vector<2x128xf32>
    %68 = arith.addf %60, %67 : vector<2x128xf32>
    %69 = vector.broadcast %35 : f32 to vector<2x128xf32>
    %70 = arith.addf %68, %69 : vector<2x128xf32>
    %cst_42 = arith.constant 0.000000e+00 : f32
    %71 = vector.broadcast %cst_42 : f32 to vector<2x128xf32>
    %72 = arith.cmpf oge, %70, %71 : vector<2x128xf32>
    %73 = arith.extui %72 : vector<2x128xi1> to vector<2x128xi32>
    %74 = arith.sitofp %73 : vector<2x128xi32> to vector<2x128xf32>
    %75 = arith.mulf %74, %23 : vector<2x128xf32>
    %76 = arith.subf %22, %75 : vector<2x128xf32>
    %c0_43 = arith.constant 0 : index
    %c0_44 = arith.constant 0 : index
    %77 = memref.load %arg8[%c0_43, %c0_44] : memref<1x4xf32, #tpu.memory_space<smem>>
    %78 = arith.mulf %32, %30 : vector<2x128xf32>
    %79 = vector.shape_cast %78 : vector<2x128xf32> to vector<1x2x128xf32>
    %cst_45 = arith.constant dense<0.000000e+00> : vector<1xf32>
    %80 = vector.multi_reduction <add>, %79, %cst_45 [1, 2] : vector<1x2x128xf32> to vector<1xf32>
    %81 = vector.shape_cast %80 : vector<1xf32> to vector<1x1x1xf32>
    %82 = vector.extract %81[0, 0, 0] : f32 from vector<1x1x1xf32>
    %83 = arith.addf %77, %82 : f32
    %c0_46 = arith.constant 0 : index
    %c0_47 = arith.constant 0 : index
    %84 = memref.load %arg8[%c0_46, %c0_47] : memref<1x4xf32, #tpu.memory_space<smem>>
    memref.store %83, %arg8[%c0_46, %c0_47] : memref<1x4xf32, #tpu.memory_space<smem>>
    %c0_48 = arith.constant 0 : index
    %c1_49 = arith.constant 1 : index
    %85 = memref.load %arg8[%c0_48, %c1_49] : memref<1x4xf32, #tpu.memory_space<smem>>
    %86 = vector.shape_cast %30 : vector<2x128xf32> to vector<1x2x128xf32>
    %cst_50 = arith.constant dense<0.000000e+00> : vector<1xf32>
    %87 = vector.multi_reduction <add>, %86, %cst_50 [1, 2] : vector<1x2x128xf32> to vector<1xf32>
    %88 = vector.shape_cast %87 : vector<1xf32> to vector<1x1x1xf32>
    %89 = vector.extract %88[0, 0, 0] : f32 from vector<1x1x1xf32>
    %90 = arith.addf %85, %89 : f32
    %c0_51 = arith.constant 0 : index
    %c1_52 = arith.constant 1 : index
    %91 = memref.load %arg8[%c0_51, %c1_52] : memref<1x4xf32, #tpu.memory_space<smem>>
    memref.store %90, %arg8[%c0_51, %c1_52] : memref<1x4xf32, #tpu.memory_space<smem>>
    %c0_53 = arith.constant 0 : index
    %c2_54 = arith.constant 2 : index
    %92 = memref.load %arg8[%c0_53, %c2_54] : memref<1x4xf32, #tpu.memory_space<smem>>
    %93 = arith.mulf %76, %25 : vector<2x128xf32>
    %94 = vector.shape_cast %93 : vector<2x128xf32> to vector<1x2x128xf32>
    %cst_55 = arith.constant dense<0.000000e+00> : vector<1xf32>
    %95 = vector.multi_reduction <add>, %94, %cst_55 [1, 2] : vector<1x2x128xf32> to vector<1xf32>
    %96 = vector.shape_cast %95 : vector<1xf32> to vector<1x1x1xf32>
    %97 = vector.extract %96[0, 0, 0] : f32 from vector<1x1x1xf32>
    %98 = arith.addf %92, %97 : f32
    %c0_56 = arith.constant 0 : index
    %c2_57 = arith.constant 2 : index
    %99 = memref.load %arg8[%c0_56, %c2_57] : memref<1x4xf32, #tpu.memory_space<smem>>
    memref.store %98, %arg8[%c0_56, %c2_57] : memref<1x4xf32, #tpu.memory_space<smem>>
    %c0_58 = arith.constant 0 : index
    %c3_59 = arith.constant 3 : index
    %100 = memref.load %arg8[%c0_58, %c3_59] : memref<1x4xf32, #tpu.memory_space<smem>>
    %101 = vector.shape_cast %25 : vector<2x128xf32> to vector<1x2x128xf32>
    %cst_60 = arith.constant dense<0.000000e+00> : vector<1xf32>
    %102 = vector.multi_reduction <add>, %101, %cst_60 [1, 2] : vector<1x2x128xf32> to vector<1xf32>
    %103 = vector.shape_cast %102 : vector<1xf32> to vector<1x1x1xf32>
    %104 = vector.extract %103[0, 0, 0] : f32 from vector<1x1x1xf32>
    %105 = arith.addf %100, %104 : f32
    %c0_61 = arith.constant 0 : index
    %c3_62 = arith.constant 3 : index
    %106 = memref.load %arg8[%c0_61, %c3_62] : memref<1x4xf32, #tpu.memory_space<smem>>
    memref.store %105, %arg8[%c0_61, %c3_62] : memref<1x4xf32, #tpu.memory_space<smem>>
    return
  }
  func.func @transform_0(%arg0: i32) -> (i32, i32) {
    %c0_i32 = arith.constant 0 : i32
    %c0_i32_0 = arith.constant 0 : i32
    return %c0_i32, %arg0 : i32, i32
  }
  func.func @transform_1(%arg0: i32) -> (i32, i32) {
    %c0_i32 = arith.constant 0 : i32
    %c0_i32_0 = arith.constant 0 : i32
    return %c0_i32, %arg0 : i32, i32
  }
  func.func @transform_2(%arg0: i32) -> (i32, i32) {
    %c0_i32 = arith.constant 0 : i32
    %c0_i32_0 = arith.constant 0 : i32
    return %c0_i32, %arg0 : i32, i32
  }
  func.func @transform_3(%arg0: i32) -> (i32, i32) {
    %c0_i32 = arith.constant 0 : i32
    %c0_i32_0 = arith.constant 0 : i32
    return %c0_i32, %arg0 : i32, i32
  }
  func.func @transform_4(%arg0: i32) -> (i32, i32, i32) {
    %c0_i32 = arith.constant 0 : i32
    %c0_i32_0 = arith.constant 0 : i32
    %c0_i32_1 = arith.constant 0 : i32
    return %c0_i32, %c0_i32_0, %arg0 : i32, i32, i32
  }
  func.func @transform_5(%arg0: i32) -> (i32, i32) {
    %c0_i32 = arith.constant 0 : i32
    %c0_i32_0 = arith.constant 0 : i32
    %c0_i32_1 = arith.constant 0 : i32
    return %c0_i32, %c0_i32_0 : i32, i32
  }
  func.func @transform_6(%arg0: i32) -> i32 {
    %c0_i32 = arith.constant 0 : i32
    %c0_i32_0 = arith.constant 0 : i32
    return %c0_i32 : i32
  }
  func.func @transform_7(%arg0: i32) -> (i32, i32) {
    %c0_i32 = arith.constant 0 : i32
    %c0_i32_0 = arith.constant 0 : i32
    %c0_i32_1 = arith.constant 0 : i32
    return %c0_i32, %c0_i32_0 : i32, i32
  }
}

</mosaic_0001>

<bundles_post_ra>
// kernel: semi_supervised_bce_loss.1
= control target key start
LH: loop header
LB: loop body
LE: loop exit
PB: predicated region body
PF: predicated region fallthrough
CT: control target
= control target key end

     0   :  { %12 = vsyncpa [#allocation4], 0  ;;  %s1057_s0 = inlined_call_operand.vmem [shape: f32[2,256], index: 0, kind: input, shape index: {}]   ;;  %s1058_s1 = inlined_call_operand.vmem [shape: s8[2,256], index: 1, kind: input, shape index: {}]   ;;  %s1059_s2 = inlined_call_operand.vmem [shape: s8[2,256], index: 2, kind: input, shape index: {}]   ;;  %s1060_s3 = inlined_call_operand.vmem [shape: s8[2,256], index: 3, kind: input, shape index: {}]   ;;  %s1061_s4 = inlined_call_operand.vmem [shape: f32[2,4,256], index: 4, kind: input, shape index: {}]   ;;  %s1062_s5 = inlined_call_operand.vmem [shape: f32[2,4], index: 5, kind: input, shape index: {}]   ;;  %s1063_s6 = inlined_call_operand.vmem [shape: f32[2], index: 6, kind: input, shape index: {}]   ;;  %s1064_s7 = inlined_call_operand.vmem [shape: f32[1,4], index: 7, kind: output, shape index: {}]  }
   0x1   :  { %13 = vsyncpa [#allocation7], 0 }
   0x2   :  { %14 = vsyncpa [#allocation5], 0  ;;  %s903_s24 = smov 0   ;;  %s905_s25 = smov 0  }
   0x3   :  { %s907_s26 = smov 0  }
   0x4 LB: > { %s919_s27 = sadd.s32 4294967295, %s856_s26   ;;  %s922_s28 = sadd.s32 1, %s856_s26   ;;  %s856_s26 = sphi %s907_s26, %s1082_s26   ;;  %s852_s25 = sphi %s905_s25, %s1081_s25   ;;  %s848_s24 = sphi %s903_s24, %s1080_s24  }
   0x5   : > { %s128_s29 = ssub.s32 %s856_s26, %s922_s28  ;;  %s131_s30 = sadd.s32 1, %s852_s25 }
   0x6   : > { %p129_p0 = scmp.eq.s32.totalorder %s128_s29, 0  ;;  %p138_p1 = scmp.ne.s32.totalorder %s852_s25, %s848_s24 }
   0x7   : > { %p139_p2 = scmp.eq.s32.totalorder %s856_s26, 0  ;;  %p677_p3 = scmp.ge.s32.totalorder %s856_s26, 1 }
   0x8   : > { %s932_s8 = scalar_select %p129_p0, %s852_s25, %s131_s30  }
   0x9   : > { %p934_p4 = por %p139_p2, %p138_p1  ;;  %p218_p5 = scmp.lt.s32.totalorder %s856_s26, 3 }
   0xa   : > { %p1065_p6 = scmp.eq.s32.totalorder %s919_s27, 0  ;;  %s231_s13 = sshll.u32 %s1062_s5, 4  ;;  %s232_s13 = int_to_ptr.vmem [resolvable:$true] %s231_s13 }
   0xb   : > { %s1067_s9 = scalar_select %p934_p4, 1, 0 }
   0xc   : > { %p940_p7 = pnand %p677_p3, %p218_p5  ;;  %s242_s16 = sshll.u32 %s1063_s6, 4  ;;  %s243_s16 = int_to_ptr.vmem [resolvable:$true] %s242_s16 }
   0xd   : > { %s778_s18 = scalar_lea.vmem %s232_s13, 32  ;;  %p786_p0 = scmp.lt.s32.totalorder %s232_s13, %s232_s13 }
   0xe   : > { %s1068_s10 = scalar_select %p940_p7, 1, 0 }
   0xf   : > { %p731_p8 = pneg %p940_p7  ;;  %p779_p10 = scmp.ne.s32.totalorder %s232_s13, %s778_s18 }
  0x10   : > { %p787_p1 = scmp.lt.s32.totalorder %s778_s18, %s778_s18 }
  0x11   : > { %p954_p9 = pnand %p1065_p6, %p731_p8 }
  0x12   : > { %p788_p2 = por %p787_p1, %p786_p0 }
  0x13   : > { %p780_p11 = pneg %p954_p9 }
  0x15   : > { %p781_p12 = pnand %p780_p11, %p779_p10 }
  0x17   : > { %p782_p13 = pneg %p781_p12 }
  0x19   : > { %p789_p3 = pnand %p788_p2, %p782_p13 }
  0x1b   : > { %792 = shalt.err (!%p789_p3)
}
  0x1c   : > { %s858_s19 = smov [#allocation3]   ;;  %s793_s20 = scalar_lea.vmem %s243_s16, 16 }
  0x1d   : > { %734 = dma.vmem_to_smem (!%p954_p9), %s232_s13, 32, %s858_s19, [#allocation4]  }
  0x1e   : > { %p794_p5 = scmp.ne.s32.totalorder %s243_s16, %s793_s20  ;;  %p801_p7 = scmp.lt.s32.totalorder %s243_s16, %s243_s16 }
  0x1f   : > { %p802_p4 = scmp.lt.s32.totalorder %s793_s20, %s793_s20 }
  0x20   : > { %p796_p8 = pnand %p794_p5, %p780_p11 }
  0x21   : > { %p803_p10 = por %p802_p4, %p801_p7 }
  0x22   : > { %p797_p6 = pneg %p796_p8 }
  0x24   : > { %p804_p12 = pnand %p803_p10, %p797_p6 }
  0x26   : > { %807 = shalt.err (!%p804_p12)
}
  0x27   : > { %s859_s21 = smov [#allocation6]   ;;  %p680_p13 = scmp.ge.s32.totalorder %s856_s26, 2 }
  0x28   : > { %737 = dma.vmem_to_smem (!%p954_p9), %s243_s16, 16, %s859_s21, [#allocation7]  }
  0x29   : > { %249 = sbr.rel (%p680_p13) target bundleno = 51 (0x33), region = 24  ;;  %p1070_p0 = scmp.ne.s32.totalorder (!%p680_p13), %s1067_s9, 0 }
  0x2e   : > { %277 = sbr.rel (!%p1070_p0) target bundleno = 51 (0x33), region = 44  ;;  %s279_s22 = sand.u32 (%p1070_p0), 1, %s852_s25  }
  0x2f   : > { %s682_s23 = sshll.u32 (%p1070_p0), %s856_s26, 2  ;;  %s681_s29 = sshll.u32 (%p1070_p0), %s279_s22, 3 }
  0x30   : > { %s283_s12 = scalar_lea.vmem (%p1070_p0), %s1061_s4, %s682_s23  ;;  %s281_s13 = scalar_lea.vmem (%p1070_p0), [#allocation2], %s681_s29 }
  0x31   : > { %v300_v0 = vld [vmem:[%s283_s12] sm:$0xf] (%p1070_p0)  ;;  %v302_v1 = vld [vmem:[%s283_s12 + $0x8] sm:$0xf] (%p1070_p0) }
  0x32   : > { %301 = vst [vmem:[%s281_s13] sm:$0xf] (%p1070_p0), %v300_v0  ;;  %303 = vst [vmem:[%s281_s13 + $0x4] sm:$0xf] (%p1070_p0), %v302_v1 }
  0x33 PF: > { %p1071_p4 = scmp.ne.s32.totalorder %s1068_s10, 0 }
  0x34   : > { %s337_s9 = sand.u32 (!%p1071_p4), 1, %s848_s24   ;;  %p1072_p6 = scmp.eq.s32.totalorder (!%p1071_p4), %s919_s27, 0 }
  0x35   : > { %334 = sbr.rel (%p1071_p4) target bundleno = 343 (0x157), region = 85  ;;  %s684_s14 = sshll.u32 (!%p1071_p4), %s337_s9, 3 }
  0x36   : > { %s975_s26 = scalar_lea.vmem (!%p1071_p4), [#allocation2], %s684_s14 }
  0x3a   : > { %835 = dma.done.wait (%p1072_p6), [#allocation4], 32   ;;  %p1073_p7 = pmov %p1072_p6 }
  0x3b   : > { %p1074_p9 = pmov %p1072_p6 }
  0x3c   : > { %837 = vsyncadd (%p1073_p7), [#allocation4], 4294967264 }
  0x3d   : > { %839 = dma.done.wait (%p1074_p9), [#allocation7], 16   ;;  %p1075_p11 = pmov %p1072_p6 }
  0x3f   : > { %841 = vsyncadd (%p1075_p11), [#allocation7], 4294967280 }
  0x40   : > { %351 = sfence }
  0x41   : > { %p385_p1 = scmp.lt.s32.totalorder %s919_s27, 1  ;;  %s441_s18 = sld [smem:[#allocation3]]  ;;  %v444_v6 = vld [vmem:[%s975_s26] sm:$0x1]  ;;  %v445_v7 = vld [vmem:[%s975_s26 + $0x4] sm:$0x1] }
  0x42   : > { %s690_s19 = sld [smem:[#allocation3 + $0x80]]  ;;  %v454_v10 = vld [vmem:[%s975_s26 + $0x1] sm:$0x1]  ;;  %v455_v11 = vld [vmem:[%s975_s26 + $0x5] sm:$0x1]  ;;  %v860_v56 = vmov 0.0   ;;  %p1076_p2 = pmov %p1072_p6 }
  0x43   : > { %s987_s10 = scalar_select %p385_p1, %s919_s27, 1  ;;  %v464_v18 = vld [vmem:[%s975_s26 + $0x2] sm:$0x1]  ;;  %v465_v19 = vld [vmem:[%s975_s26 + $0x6] sm:$0x1]  ;;  %vm505_vm2 = vcmask 1041408  }
  0x44   : > { %s691_s20 = sld [smem:[#allocation3 + $0x1]]  ;;  %v474_v25 = vld [vmem:[%s975_s26 + $0x3] sm:$0x1]  ;;  %v475_v26 = vld [vmem:[%s975_s26 + $0x7] sm:$0x1]  ;;  %vm499_vm3 = vcmask 1041409   ;;  %p1077_p3 = pmov %p1076_p2 }
  0x45   : > { %s687_s24 = sshll.u32 %s987_s10, 1  ;;  %s692_s21 = sld [smem:[#allocation3 + $0x81]] }
  0x46   : > { %s388_s17 = scalar_lea.vmem %s1057_s0, %s687_s24  ;;  %s693_s22 = sld [smem:[#allocation3 + $0x2]] }
  0x47   : > { %v993_v2 = vld [vmem:[%s388_s17] sm:$0x3]  ;;  %s694_s23 = sld [smem:[#allocation3 + $0x82]]  ;;  %s391_s17 = scalar_lea.vmem %s1058_s1, %s987_s10 }
  0x48   : > { %v412_v3 = vand.u32 2147483647, %v993_v2  ;;  %s443_s29 = sadd.f32 %s690_s19, %s441_s18  ;;  %v426_v32 = vld [vmem:[%s391_s17] sm:$0x1]  ;;  %v411_v33 = vmax.f32 %v993_v2, 0.0  ;;  %s861_s26 = smov 0.0  }
  0x49   : > { %s996_s30 = sld [smem:[#allocation3 + $0x3]]  ;;  %v427_v41 = vunpack.c.0.s8 %v426_v32  ;;  %p1078_p5 = pmov %p1076_p2 }
  0x4a   : > { %v413_v4 = vsub.f32 0.0, %v412_v3  ;;  %s696_s11 = sld [smem:[#allocation3 + $0x83]]  ;;  %v446_v9 = vstv %s443_s29  ;;  %p1079_p8 = pmov %p1076_p2 }
  0x4b   : > { %s453_s12 = sadd.f32 %s692_s21, %s691_s20  ;;  %v447_v14 = vmul.f32 %v446_v9, %v444_v6  ;;  %v448_v15 = vmul.f32 %v446_v9, %v445_v7  ;;  %s394_s20 = scalar_lea.vmem %s1059_s2, %s987_s10  ;;  %v428_v49 = vcvt.s32.f32 %v427_v41 }
  0x4c   : > { %v414_v5 = vmul.f32 1.442695, %v413_v4  ;;  %s1002_s9 = sld [smem:[#allocation6]]  ;;  %v429_v34 = vld [vmem:[%s394_s20] sm:$0x1]  ;;  %s569_s19 = sshll.u32 %s1064_s7, 4  ;;  %s570_s19 = int_to_ptr.vmem [resolvable:$true] %s569_s19 }
  0x4d   : > { %v456_v12 = vstv %s453_s12  ;;  %s463_s13 = sadd.f32 %s694_s23, %s693_s22  ;;  %s397_s23 = scalar_lea.vmem %s1060_s3, %s987_s10  ;;  %v430_v42 = vunpack.c.0.s8 %v429_v34  ;;  %v549_v9 = vsel %vm505_vm2, %v428_v49, 0.0 }
  0x4e   : > { %774 = vpow2.f32 %v414_v5  ;;  %s1004_s14 = sld [smem:[#allocation6 + $0x1]]  ;;  %v457_v16 = vmul.f32 %v456_v12, %v454_v10  ;;  %v458_v17 = vmul.f32 %v456_v12, %v455_v11  ;;  %v432_v35 = vld [vmem:[%s397_s23] sm:$0x1]  ;;  %p743_p10 = scmp.eq.s32.totalorder %s919_s27, 1 }
  0x4f   : > { %v466_v20 = vstv %s463_s13  ;;  %v433_v43 = vunpack.c.0.s8 %v432_v35  ;;  %v431_v50 = vcvt.s32.f32 %v430_v42  ;;  %723 = sst [smem:[#allocation8]] (%p1076_p2), %s861_s26  ;;  %s808_s22 = scalar_lea.vmem %s570_s19, 16 }
  0x50   : > { %s473_s24 = sadd.f32 %s696_s11, %s996_s30  ;;  %v459_v21 = vadd.f32 %v457_v16, %v447_v14  ;;  %v460_v22 = vadd.f32 %v458_v17, %v448_v15  ;;  %v467_v23 = vmul.f32 %v466_v20, %v464_v18  ;;  %v468_v24 = vmul.f32 %v466_v20, %v465_v19  ;;  %p809_p12 = scmp.ne.s32.totalorder %s570_s19, %s808_s22 }
  0x51   : > { %v434_v51 = vcvt.s32.f32 %v433_v43  ;;  %v435_v59 = vmul.f32 %v431_v50, %v428_v49  ;;  %724 = sst [smem:[#allocation8 + $0x1]] (%p1077_p3), %s861_s26  ;;  %p815_p4 = scmp.lt.s32.totalorder %s570_s19, %s570_s19 }
  0x52   : > { %v476_v27 = vstv %s473_s24  ;;  %v469_v28 = vadd.f32 %v467_v23, %v459_v21  ;;  %v470_v29 = vadd.f32 %v468_v24, %v460_v22  ;;  %725 = sst [smem:[#allocation8 + $0x2]] (%p1078_p5), %s861_s26  ;;  %p810_p13 = pnand %p809_p12, %p743_p10 }
  0x53   : > { %v477_v30 = vmul.f32 %v476_v27, %v474_v25  ;;  %v478_v31 = vmul.f32 %v476_v27, %v475_v26  ;;  %v520_v6 = vsel %vm505_vm2, %v435_v59, 0.0  ;;  %726 = sst [smem:[#allocation8 + $0x3]] (%p1079_p8), %s861_s26  ;;  %p816_p6 = scmp.lt.s32.totalorder %s808_s22, %s808_s22 }
  0x54   : > { %s440_s29 = sadd.f32 %s1004_s14, %s1002_s9  ;;  %p811_p0 = pneg %p810_p13 }
  0x55   : > { %v479_v36 = vadd.f32 %v477_v30, %v469_v28  ;;  %v480_v37 = vadd.f32 %v478_v31, %v470_v29  ;;  %s503_s10 = sld [smem:[#allocation8]]  ;;  %p817_p7 = por %p816_p6, %p815_p4 }
  0x56   : > { %v481_v39 = vstv %s440_s29  ;;  %s699_s30 = sld [smem:[#allocation8 + $0x1]] }
  0x57   : > { %v482_v45 = vadd.f32 %v481_v39, %v479_v36  ;;  %v483_v46 = vadd.f32 %v481_v39, %v480_v37  ;;  %s700_s11 = sld [smem:[#allocation8 + $0x2]]  ;;  %p818_p9 = pnand %p817_p7, %p811_p0 }
  0x58   : > { %s701_s9 = sld [smem:[#allocation8 + $0x3]] }
  0x59   : > { %vm484_vm0 = vcmp.ge.f32.partialorder %v482_v45, 0.0  ;;  %vm485_vm1 = vcmp.ge.f32.partialorder %v483_v46, 0.0 }
  0x5a   : > { %v697_v57 = vsel %vm484_vm0, 1.0, %v860_v56  ;;  %v698_v58 = vsel %vm485_vm1, 1.0, %v860_v56 }
  0x5b   : > { %v775_v8 = vpop.eup %774 }
  0x5c   : > { %v416_v13 = vadd.f32 1.0, %v775_v8 }
  0x5e   : > { %776 = vlog2.f32 %v416_v13 }
  0x6b   : > { %v777_v38 = vpop.eup %776 }
  0x6c   : > { %v418_v40 = vmul.f32 0.6931472, %v777_v38 }
  0x6e   : > { %v419_v44 = vadd.f32 %v418_v40, %v411_v33 }
  0x70   : > { %v420_v47 = vsub.f32 %v993_v2, %v419_v44  ;;  %v422_v48 = vsub.f32 0.0, %v419_v44 }
  0x72   : > { %v421_v52 = vmax.f32 %v420_v47, -100.0  ;;  %v423_v53 = vmax.f32 %v422_v48, -100.0 }
  0x74   : > { %v424_v54 = vsub.f32 0.0, %v423_v53  ;;  %v425_v55 = vsub.f32 %v421_v52, %v423_v53 }
  0x76   : > { %v436_v60 = vmul.f32 %v434_v51, %v425_v55  ;;  %v491_v61 = vrot.slane %v425_v55, 1  ;;  %v494_v63 = vmul.f32 %v697_v57, %v425_v55 }
  0x78   : > { %v437_v62 = vsub.f32 %v424_v54, %v436_v60  ;;  %v495_v0 = vmul.f32 %v698_v58, %v491_v61 }
  0x7a   : > { %v504_v1 = vmul.f32 %v437_v62, %v435_v59  ;;  %v498_v2 = vrot.slane %v495_v0, 7 }
  0x7c   : > { %v506_v3 = vsel %vm505_vm2, %v504_v1, 0.0  ;;  %v500_v4 = vsel %vm499_vm3, %v498_v2, %v494_v63 }
  0x7d   : > { %507 = vadd.xlane.f32.xlu0 %v506_v3  ;;  %v502_v5 = vsub.f32 %v424_v54, %v500_v4 }
  0x7f   : > { %v534_v7 = vmul.f32 %v502_v5, %v428_v49 }
  0x81   : > { %521 = vadd.xlane.f32.xlu0 %v520_v6  ;;  %v535_v8 = vsel %vm505_vm2, %v534_v7, 0.0 }
  0x82   : > { %536 = vadd.xlane.f32.xlu1 %v535_v8 }
  0x86   : > { %550 = vadd.xlane.f32.xlu1 %v549_v9 }
 0x106   : > { %v508_v10 = vpop.xlane.xlu0 %507 }
 0x107   : > { %v509_v11 = vrot.slane %v508_v10, 4 }
 0x109   : > { %v510_v12 = vadd.f32 %v509_v11, %v508_v10 }
 0x10a   : > { %v522_v13 = vpop.xlane.xlu0 %521 }
 0x10b   : > { %v511_v14 = vrot.slane %v510_v12, 2  ;;  %v523_v15 = vrot.slane %v522_v13, 4  ;;  %v537_v16 = vpop.xlane.xlu1 %536 }
 0x10c   : > { %v538_v17 = vrot.slane %v537_v16, 4 }
 0x10d   : > { %v524_v18 = vadd.f32 %v523_v15, %v522_v13  ;;  %v512_v19 = vadd.f32 %v511_v14, %v510_v12 }
 0x10e   : > { %v539_v20 = vadd.f32 %v538_v17, %v537_v16 }
 0x10f   : > { %v525_v21 = vrot.slane %v524_v18, 2  ;;  %v551_v22 = vpop.xlane.xlu1 %550  ;;  %v513_v23 = vrot.slane %v512_v19, 1 }
 0x110   : > { %v540_v24 = vrot.slane %v539_v20, 2  ;;  %v552_v25 = vrot.slane %v551_v22, 4 }
 0x111   : > { %v526_v26 = vadd.f32 %v525_v21, %v524_v18  ;;  %v514_v27 = vadd.f32 %v513_v23, %v512_v19 }
 0x112   : > { %v553_v28 = vadd.f32 %v552_v25, %v551_v22  ;;  %v541_v29 = vadd.f32 %v540_v24, %v539_v20 }
 0x113   : > { %706 = vpush %v514_v27  ;;  %v527_v30 = vrot.slane %v526_v26, 1 }
 0x114   : > { %v554_v31 = vrot.slane %v553_v28, 2  ;;  %v542_v32 = vrot.slane %v541_v29, 1 }
 0x115   : > { %v528_v33 = vadd.f32 %v527_v30, %v526_v26 }
 0x116   : > { %v555_v34 = vadd.f32 %v554_v31, %v553_v28  ;;  %v543_v35 = vadd.f32 %v542_v32, %v541_v29 }
 0x117   : > { %708 = vpush %v528_v33 }
 0x118   : > { %710 = vpush %v543_v35  ;;  %v556_v36 = vrot.slane %v555_v34, 1 }
 0x11a   : > { %v557_v37 = vadd.f32 %v556_v36, %v555_v34 }
 0x11c   : > { %712 = vpush %v557_v37 }
 0x144   : > { %s707_s12 = spop %706 }
 0x145   : > { %s516_s13 = sadd.f32 %s707_s12, %s503_s10 }
 0x147   : > { %518 = sst [smem:[#allocation8]] %s516_s13 }
 0x148   : > { %s709_s14 = spop %708 }
 0x149   : > { %s530_s24 = sadd.f32 %s709_s14, %s699_s30  ;;  %s711_s15 = spop %710 }
 0x14a   : > { %s545_s16 = sadd.f32 %s711_s15, %s700_s11 }
 0x14b   : > { %532 = sst [smem:[#allocation8 + $0x1]] %s530_s24 }
 0x14c   : > { %547 = sst [smem:[#allocation8 + $0x2]] %s545_s16 }
 0x14d   : > { %s713_s20 = spop %712 }
 0x14e   : > { %s559_s21 = sadd.f32 %s713_s20, %s701_s9 }
 0x150   : > { %561 = sst [smem:[#allocation8 + $0x3]] %s559_s21 }
 0x151   : > { %821 = shalt.err (!%p818_p9)
}
 0x152   : > { %s862_s23 = smov [#allocation8]  }
 0x153   : > { %728 = dma.smem_to_vmem (%p743_p10), %s862_s23, 16, %s570_s19, [#allocation5]  }
 0x154   : > { %843 = dma.done.wait (%p743_p10), [#allocation5], 16  }
 0x155   : > { %845 = vsyncadd (%p743_p10), [#allocation5], 4294967280 }
 0x156   : > { %577 = sfence }
 0x157 PF: > { %p17_p11 = scmp.ge.s32.totalorder %s922_s28, 4   ;;  %s1080_s24 = smov %s852_s25 }
 0x158   : > { %s1081_s25 = smov %s932_s8  ;;  %s1082_s26 = smov %s922_s28 }
 0x159   :  { %19 = sbr.rel (!%p17_p11) target bundleno = 4 (0x4), region = 154 }
 0x15e   :  { %583 = vsyncpa [#allocation4], 1 }
 0x15f   :  { %585 = vsyncpa [#allocation4 + $0x1], 1 }
 0x160   :  { %586 = vsyncpa [#allocation7], 1 }
 0x161   :  { %587 = vsyncpa [#allocation5], 1 }
 0x162   :  { %589 = vsyncpa [#allocation5 + $0x1], 1 }

</bundles_post_ra>
